<compile_context>
chip_gen: v6e
topology: v6e:2x2x1
jax: 0.10.0
libtpu: 0.0.40
codegen_flags: <defaults>
</compile_context>

<pallas_src>
import math

import jax
import jax.numpy as jnp
from jax.experimental import pallas as pl
from jax.experimental.pallas import tpu as pltpu


_VMEM_WORK_BUDGET = 26 * 1024 * 1024   # target working set: 2x-buffered inputs + intermediates
_VMEM_LIMIT_BYTES = 40 * 1024 * 1024   # scoped-VMEM limit for Mosaic (safe on v5e/v6e/v7x)
_ROW_ALIGN = 16                        # sublane-friendly row-tile granularity (f32 & bf16)
_N_CORE_SPLIT = 2                      # leading "parallel" axis: both TCs on v7x, harmless elsewhere
_MAX_PACKED_LANES = 32768              # cap on packed row width


def _round_up(x, m):
    return (x + m - 1) // m * m


def _make_kernel(pack, t2):
    """Gold-energy gather-reduce kernel.

    scores_ref: (rows, pack*t2) native dtype -- `pack` (s,b) rows folded into lanes
    idx_ref:    (rows, pack) int32 -- flat within-row gold index, -1 = masked/pad
    out_ref:    (1, 1, 1) f32 -- per-core partial (resident across the inner axis)
    acc_ref:    (1, pack*t2) f32 scratch -- per-lane-column accumulator
    """

    def kernel(scores_ref, idx_ref, out_ref, acc_ref):
        step = pl.program_id(1)

        @pl.when(step == 0)
        def _():
            acc_ref[...] = jnp.zeros_like(acc_ref)

        scores = scores_ref[...]                      # (rows, W) native dtype
        idx = idx_ref[...]                            # (rows, pack) int32
        lane = jax.lax.broadcasted_iota(jnp.int32, scores.shape, 1)

        if pack == 1:
            sel = lane == idx                         # (rows, 1) broadcasts over lanes
        else:
            # Expand (rows, pack) gold indices to per-lane values with a one-hot
            # matmul on the otherwise-idle MXU (avoids unsupported lane reshapes).
            w = scores.shape[1]
            col = jax.lax.broadcasted_iota(jnp.int32, (pack, w), 1)
            row = jax.lax.broadcasted_iota(jnp.int32, (pack, w), 0)
            d = col - row * t2
            expand = ((d >= 0) & (d < t2)).astype(jnp.float32)        # (pack, W)
            gold = jnp.dot(idx.astype(jnp.float32), expand,
                           preferred_element_type=jnp.float32)        # (rows, W)
            sel = lane.astype(jnp.float32) == gold    # exact: small ints / -1 only

        # Select in the native dtype (no up-front f32 cast of the big block).
        # Masked / padded / stale rows carry -1 indices -> never selected.
        picked = jnp.where(sel, scores, jnp.zeros((), scores.dtype))
        # Deferred reduction: sublane-direction sum (VPU-dominated) into the
        # resident f32 accumulator; upcast only when adding.
        acc_ref[...] += jnp.sum(picked.astype(jnp.float32), axis=0, keepdims=True)

        @pl.when(step == pl.num_programs(1) - 1)
        def _():
            # Single cross-lane reduce per core, done once at the end.
            out_ref[0] = jnp.sum(acc_ref[...], axis=1, keepdims=True)

    return kernel


def crf_loss(forward_score, scores, masks, tags, transitions, stop_tag,
             start_tag=None, vmem_work_budget=_VMEM_WORK_BUDGET):
    """forward_score: scalar, scores: (S,B,T,T), masks: (B,S), tags: (B,S),
    transitions: (T,T).  Returns forward_score - gold_score (scalar, f32).
    Assumes every sequence has length >= 1 (as the PyTorch module does)."""
    S, B, T, _ = scores.shape
    T2 = T * T
    R = S * B
    if start_tag is None:
        start_tag = T - 2                             # PyTorch convention: START = tag_size - 2

    tags_i = tags.astype(jnp.int32)                   # (B, S)
    mask_b = masks > 0                                # (B, S)

    # Gold pair index prev_tag*T + cur_tag (START for position 0); -1 where masked.
    prev_tags = jnp.concatenate(
        [jnp.full((B, 1), start_tag, jnp.int32), tags_i[:, :-1]], axis=1)
    new_tags = jnp.where(mask_b, prev_tags * T + tags_i, -1)        # (B, S)
    new_tags_sb = new_tags.T.reshape(R)                             # row r = s*B + b

    # ---- lane packing: fold `pack` consecutive (s,b) rows into one lane-dense row ----
    if T2 % 128 == 0:
        pack = 1                                      # already lane-aligned
    else:
        pack_min = 128 // math.gcd(T2, 128)           # smallest pack with pack*T2 % 128 == 0
        pack = pack_min if (R % pack_min == 0 and pack_min * T2 <= _MAX_PACKED_LANES) else 1
    Rp = R // pack
    W = pack * T2

    scores2d = scores.reshape(Rp, W)                  # free: contiguous reshape, no copy
    if pack == 1:
        idx2d = new_tags_sb.reshape(Rp, 1)
    else:
        offs = (jnp.arange(pack, dtype=jnp.int32) * T2)[None, :]
        flat = new_tags_sb.reshape(Rp, pack)
        idx2d = jnp.where(flat >= 0, flat + offs, -1)               # flat index within packed row

    # ---- VMEM-aware row tiling: account for lane padding, double buffering and
    #      block-sized in-kernel intermediates; pick the largest fitting tile ----
    w_pad = _round_up(W, 128)
    itemsize = scores.dtype.itemsize
    per_row_vmem = (2 * (w_pad * itemsize + _round_up(pack, 128) * 4)   # 2x-buffered inputs
                    + 4 * w_pad * 4)                                    # intermediates margin
    budget_rows = max(1, int(vmem_work_budget) // per_row_vmem)
    if budget_rows >= Rp:
        rows_tile = Rp
    else:
        rows_tile = max(_ROW_ALIGN, (budget_rows // _ROW_ALIGN) * _ROW_ALIGN)
        rows_tile = min(rows_tile, Rp)

    n_blocks = pl.cdiv(Rp, rows_tile)
    n_split = _N_CORE_SPLIT if n_blocks >= _N_CORE_SPLIT else 1
    n_inner = pl.cdiv(n_blocks, n_split)
    rows_padded = n_split * n_inner * rows_tile

    # Pad ONLY the tiny index array; padded / ragged-edge scores rows are then
    # never selected (their index is -1).
    idx2d = jnp.pad(idx2d, ((0, rows_padded - Rp), (0, 0)), constant_values=-1)

    def scores_index_map(c, i):
        # Clamp so every scores block is at least partially in bounds; the duplicate
        # block an odd split produces is fully masked by the -1 index padding.
        return (jnp.minimum(c * n_inner + i, n_blocks - 1), 0)

    def idx_index_map(c, i):
        return (c * n_inner + i, 0)

    cost = pl.CostEstimate(
        flops=2 * R * T2,
        transcendentals=0,
        bytes_accessed=int(R * T2 * itemsize + rows_padded * pack * 4 + n_split * 4),
    )

    partials = pl.pallas_call(
        _make_kernel(pack, T2),
        out_shape=jax.ShapeDtypeStruct((n_split, 1, 1), jnp.float32),
        grid=(n_split, n_inner),
        in_specs=[
            pl.BlockSpec((rows_tile, W), scores_index_map),
            pl.BlockSpec((rows_tile, pack), idx_index_map),
        ],
        out_specs=pl.BlockSpec((1, 1, 1), lambda c, i: (c, 0, 0)),
        scratch_shapes=[pltpu.VMEM((1, W), jnp.float32)],
        compiler_params=pltpu.CompilerParams(
            dimension_semantics=("parallel", "arbitrary"),
            vmem_limit_bytes=_VMEM_LIMIT_BYTES),
        cost_estimate=cost,
    )(scores2d, idx2d)

    tg_sum = jnp.sum(partials)

    # End-transition energy: O(B) gather -> plain JAX glue (lengths assumed >= 1).
    lengths = jnp.sum(masks.astype(jnp.int32), axis=1)              # (B,)
    end_ids = tags_i[jnp.arange(B), lengths - 1]
    end_sum = jnp.sum(transitions.astype(jnp.float32)[end_ids, stop_tag])

    gold_score = tg_sum + end_sum
    return jnp.asarray(forward_score, jnp.float32) - gold_score


def crf_loss_ref(forward_score, scores, masks, tags, transitions, stop_tag):
    """Pure-JAX reference mirroring the PyTorch module."""
    S, B, T, _ = scores.shape
    scores_flat = scores.astype(jnp.float32).reshape(S, B, T * T)
    tags_i = tags.astype(jnp.int32)
    start_col = jnp.full((B, 1), T - 2, dtype=jnp.int32)
    prev_tags = jnp.concatenate([start_col, tags_i[:, :-1]], axis=1)
    new_tags = (prev_tags * T + tags_i).T                           # (S, B)
    tg = jnp.take_along_axis(scores_flat, new_tags[:, :, None], axis=2)[..., 0]
    tg_sum = jnp.sum(tg * masks.astype(jnp.float32).T)
    lengths = jnp.sum(masks.astype(jnp.int32), axis=1)
    end_ids = tags_i[jnp.arange(B), lengths - 1]
    end_sum = jnp.sum(transitions.astype(jnp.float32)[end_ids, stop_tag])
    return jnp.asarray(forward_score, jnp.float32) - (tg_sum + end_sum)


def _make_inputs(key, S, B, T, dtype):
    k1, k2, k3, k4, k5 = jax.random.split(key, 5)
    scores = jax.random.normal(k1, (S, B, T, T), dtype=jnp.float32).astype(dtype)
    transitions = jax.random.normal(k2, (T, T), dtype=jnp.float32)
    tags = jax.random.randint(k3, (B, S), 0, T - 2, dtype=jnp.int32)
    lengths = jax.random.randint(k4, (B,), 1, S + 1, dtype=jnp.int32)
    masks = (jnp.arange(S)[None, :] < lengths[:, None]).astype(jnp.float32)  # (B, S)
    forward_score = jax.random.normal(k5, (), dtype=jnp.float32) * 10.0
    return forward_score, scores, masks, tags, transitions


if __name__ == "__main__":
    key = jax.random.PRNGKey(0)
    cases = [
        # (name, S, B, T, dtype, vmem_work_budget)
        ("packed_single_block", 8, 4, 6, jnp.float32, _VMEM_WORK_BUDGET),
        # tiny budget forces multi-block tiling, 2-way core split, ragged edge + pad path
        ("packed_multi_block_split", 32, 34, 6, jnp.float32, 1 << 15),
        # R not divisible by the packing factor -> unpacked fallback path
        ("unpacked_fallback", 7, 3, 6, jnp.float32, _VMEM_WORK_BUDGET),
        # native-dtype (bf16) select path
        ("packed_bf16", 8, 4, 6, jnp.bfloat16, _VMEM_WORK_BUDGET),
    ]
    for name, S, B, T, dtype, budget in cases:
        key, sub = jax.random.split(key)
        fwd, scores, masks, tags, transitions = _make_inputs(sub, S, B, T, dtype)
        stop_tag = T - 1
        out = crf_loss(fwd, scores, masks, tags, transitions, stop_tag,
                       vmem_work_budget=budget)
        out = jax.block_until_ready(out)
        ref = crf_loss_ref(fwd, scores, masks, tags, transitions, stop_tag)
        assert jnp.allclose(out, ref, rtol=1e-4, atol=1e-3), (name, out, ref)
    print("KERNEL_OK")
</pallas_src>

<mosaic_0001>
module attributes {stable_mosaic.version = 11 : i64} {
  func.func @kernel(%arg0: i32, %arg1: i32, %arg2: memref<1x1152xf32, #tpu.memory_space<vmem>>, %arg3: memref<1x32xi32, #tpu.memory_space<vmem>>, %arg4: memref<1x1x1xf32, #tpu.memory_space<vmem>>, %arg5: memref<1x1152xf32, #tpu.memory_space<vmem>>) attributes {dimension_semantics = [#tpu.dimension_semantics<parallel>, #tpu.dimension_semantics<arbitrary>], iteration_bounds = array<i64: 1, 1>, scalar_prefetch = 0 : i64, scratch_operands = 1 : i64, tpu.core_type = #tpu.core_type<tc>, window_params = [{transform_indices = @transform_0, window_bounds = array<i64: 1, 1152>}, {transform_indices = @transform_1, window_bounds = array<i64: 1, 32>}, {transform_indices = @transform_2, window_bounds = array<i64: 1, 1, 1>}]} {
    %c0_i32 = arith.constant 0 : i32
    %0 = arith.cmpi eq, %arg1, %c0_i32 : i32
    %1 = arith.extui %0 : i1 to i32
    %c0_i32_0 = arith.constant 0 : i32
    %2 = arith.cmpi ne, %1, %c0_i32_0 : i32
    scf.if %2 {
      %cst_14 = arith.constant 0.000000e+00 : f32
      %32 = vector.broadcast %cst_14 : f32 to vector<1x1152xf32>
      %c0_15 = arith.constant 0 : index
      %c0_16 = arith.constant 0 : index
      %33 = vector.load %arg5[%c0_15, %c0_16] : memref<1x1152xf32, #tpu.memory_space<vmem>>, vector<1x1152xf32>
      tpu.vector_store %arg5[%c0_15, %c0_16], %32 {strides = array<i32>} : memref<1x1152xf32, #tpu.memory_space<vmem>>, vector<1x1152xf32>,
    } else {
    }
    %c0 = arith.constant 0 : index
    %c0_1 = arith.constant 0 : index
    %3 = vector.load %arg2[%c0, %c0_1] : memref<1x1152xf32, #tpu.memory_space<vmem>>, vector<1x1152xf32>
    %c0_2 = arith.constant 0 : index
    %c0_3 = arith.constant 0 : index
    %4 = vector.load %arg3[%c0_2, %c0_3] : memref<1x32xi32, #tpu.memory_space<vmem>>, vector<1x32xi32>
    %5 = tpu.iota {dimensions = array<i32: 1>} : vector<1x1152xi32>
    %6 = tpu.iota {dimensions = array<i32: 1>} : vector<32x1152xi32>
    %7 = tpu.iota {dimensions = array<i32: 0>} : vector<32x1152xi32>
    %c36_i32 = arith.constant 36 : i32
    %8 = vector.broadcast %c36_i32 : i32 to vector<32x1152xi32>
    %9 = arith.muli %7, %8 : vector<32x1152xi32>
    %10 = arith.subi %6, %9 : vector<32x1152xi32>
    %c0_i32_4 = arith.constant 0 : i32
    %11 = vector.broadcast %c0_i32_4 : i32 to vector<32x1152xi32>
    %12 = arith.cmpi sge, %10, %11 : vector<32x1152xi32>
    %c36_i32_5 = arith.constant 36 : i32
    %13 = vector.broadcast %c36_i32_5 : i32 to vector<32x1152xi32>
    %14 = arith.cmpi slt, %10, %13 : vector<32x1152xi32>
    %15 = arith.andi %12, %14 : vector<32x1152xi1>
    %16 = arith.extui %15 : vector<32x1152xi1> to vector<32x1152xi32>
    %17 = arith.sitofp %16 : vector<32x1152xi32> to vector<32x1152xf32>
    %18 = arith.sitofp %4 : vector<1x32xi32> to vector<1x32xf32>
    %cst = arith.constant dense<0.000000e+00> : vector<1x1152xf32>
    %19 = tpu.matmul %18, %17, %cst {dimension_numbers = #tpu.dot_dimension_numbers<[1], [0], [0], [1], [0, 0, 1, 1], [], []>} : vector<1x32xf32>, vector<32x1152xf32>, vector<1x1152xf32> -> vector<1x1152xf32>
    %20 = arith.sitofp %5 : vector<1x1152xi32> to vector<1x1152xf32>
    %21 = arith.cmpf oeq, %20, %19 : vector<1x1152xf32>
    %cst_6 = arith.constant 0.000000e+00 : f32
    %22 = vector.broadcast %cst_6 : f32 to vector<1x1152xf32>
    %23 = arith.select %21, %3, %22 : vector<1x1152xi1>, vector<1x1152xf32>
    %c0_7 = arith.constant 0 : index
    %c0_8 = arith.constant 0 : index
    %24 = vector.load %arg5[%c0_7, %c0_8] : memref<1x1152xf32, #tpu.memory_space<vmem>>, vector<1x1152xf32>
    %cst_9 = arith.constant dense<0.000000e+00> : vector<1152xf32>
    %25 = vector.multi_reduction <add>, %23, %cst_9 [0] : vector<1x1152xf32> to vector<1152xf32>
    %26 = vector.shape_cast %25 : vector<1152xf32> to vector<1x1152xf32>
    %27 = arith.addf %24, %26 : vector<1x1152xf32>
    %c0_10 = arith.constant 0 : index
    %c0_11 = arith.constant 0 : index
    %28 = vector.load %arg5[%c0_10, %c0_11] : memref<1x1152xf32, #tpu.memory_space<vmem>>, vector<1x1152xf32>
    tpu.vector_store %arg5[%c0_10, %c0_11], %27 {strides = array<i32>} : memref<1x1152xf32, #tpu.memory_space<vmem>>, vector<1x1152xf32>,
    %c0_i32_12 = arith.constant 0 : i32
    %29 = arith.cmpi eq, %arg1, %c0_i32_12 : i32
    %30 = arith.extui %29 : i1 to i32
    %c0_i32_13 = arith.constant 0 : i32
    %31 = arith.cmpi ne, %30, %c0_i32_13 : i32
    scf.if %31 {
      %c0_14 = arith.constant 0 : index
      %c0_15 = arith.constant 0 : index
      %32 = vector.load %arg5[%c0_14, %c0_15] : memref<1x1152xf32, #tpu.memory_space<vmem>>, vector<1x1152xf32>
      %cst_16 = arith.constant dense<0.000000e+00> : vector<1xf32>
      %33 = vector.multi_reduction <add>, %32, %cst_16 [1] : vector<1x1152xf32> to vector<1xf32>
      %34 = vector.shape_cast %33 : vector<1xf32> to vector<1x1xf32>
      %c0_17 = arith.constant 0 : index
      %c0_18 = arith.constant 0 : index
      %c0_19 = arith.constant 0 : index
      %35 = vector.load %arg4[%c0_17, %c0_18, %c0_19] : memref<1x1x1xf32, #tpu.memory_space<vmem>>, vector<1x1x1xf32>
      %36 = vector.shape_cast %35 : vector<1x1x1xf32> to vector<1x1xf32>
      %37 = vector.shape_cast %34 : vector<1x1xf32> to vector<1x1x1xf32>
      tpu.vector_store %arg4[%c0_17, %c0_18, %c0_19], %37 {strides = array<i32>} : memref<1x1x1xf32, #tpu.memory_space<vmem>>, vector<1x1x1xf32>,
    } else {
    }
    return
  }
  func.func @transform_0(%arg0: i32, %arg1: i32) -> (i32, i32) {
    %c1_i32 = arith.constant 1 : i32
    %0 = arith.muli %arg0, %c1_i32 : i32
    %1 = arith.addi %0, %arg1 : i32
    %c0_i32 = arith.constant 0 : i32
    %2 = arith.minsi %1, %c0_i32 : i32
    %c0_i32_0 = arith.constant 0 : i32
    %c0_i32_1 = arith.constant 0 : i32
    return %2, %c0_i32_0 : i32, i32
  }
  func.func @transform_1(%arg0: i32, %arg1: i32) -> (i32, i32) {
    %c1_i32 = arith.constant 1 : i32
    %0 = arith.muli %arg0, %c1_i32 : i32
    %1 = arith.addi %0, %arg1 : i32
    %c0_i32 = arith.constant 0 : i32
    %c0_i32_0 = arith.constant 0 : i32
    return %1, %c0_i32 : i32, i32
  }
  func.func @transform_2(%arg0: i32, %arg1: i32) -> (i32, i32, i32) {
    %c0_i32 = arith.constant 0 : i32
    %c0_i32_0 = arith.constant 0 : i32
    %c0_i32_1 = arith.constant 0 : i32
    return %arg0, %c0_i32, %c0_i32_0 : i32, i32, i32
  }
}

</mosaic_0001>

<bundles_post_ra>
// kernel: tpu_custom_call.1
= control target key start
LH: loop header
LB: loop body
LE: loop exit
PB: predicated region body
PF: predicated region fallthrough
CT: control target
= control target key end

     0   :  { %7 = vsyncpa [#allocation4], 0  ;;  %s1365_s0 = inlined_call_operand.hbm [shape: f32[1,1152], index: 0, kind: input, shape index: {}]   ;;  %s1366_s1 = inlined_call_operand.vmem [shape: s32[1,32], index: 1, kind: input, shape index: {}]   ;;  %s1367_s2 = inlined_call_operand.hbm [shape: f32[1,1,1], index: 2, kind: output, shape index: {}]  }
   0x1   :  { %8 = vsyncpa [#allocation5], 0  ;;  %s1060_s9 = smov [#allocation3]  }
   0x2   :  { %s21_s10 = sshll.u32 %s1060_s9, 4  ;;  %s22_s10 = int_to_ptr.vmem [resolvable:$true] %s21_s10 }
   0x3   :  { %s1024_s11 = scalar_lea.vmem %s22_s10, 144  ;;  %s1028_s12 = scalar_lea.vmem %s22_s10, 160 }
   0x4   :  { %p1025_p0 = scmp.ne.s32.totalorder %s22_s10, %s1024_s11  ;;  %p1029_p1 = scmp.lt.s32.totalorder %s22_s10, %s22_s10 }
   0x5   :  { %p1030_p2 = scmp.lt.s32.totalorder %s1028_s12, %s1024_s11 }
   0x7   :  { %p1031_p3 = por %p1030_p2, %p1029_p1 }
   0x9   :  { %p1032_p4 = pnand %p1031_p3, %p1025_p0 }
   0xb   :  { %1035 = shalt.err (!%p1032_p4)
}
   0xc   :  { %24 = dma.hbm_to_vmem [thread:$0]  %s1365_s0, 144, %s22_s10, [#allocation4]  }
   0xd   :  { %1056 = dma.done.wait [#allocation4], 144  }
   0xe   :  { %1057 = vsyncadd [#allocation4], 4294967152  ;;  %v52_v0 = vlaneseq  ;;  %v1061_v1 = vmov 0.0   ;;  %v1062_v21 = vmov 1.0   ;;  %v59_v35 = vld [vmem:[%s1366_s1] sm:$0x1] }
   0xf   :  { %364 = vmatprep.mubr.f32.mxu0 %v1061_v1  ;;  %435 = vmatprep.mubr.f32.mxu1 %v1061_v1  ;;  %v1193_v39 = vcvt.s32.f32 %v59_v35  ;;  %v57_v63 = vld [vmem:[#allocation3] sm:$0xff]  ;;  %s1065_s1 = smov [#allocation6]  }
  0x10   :  { %v1087_v2 = vand.u32 127, %v52_v0  ;;  %v1090_v3 = vshrl.u32 %v52_v0, 7  ;;  %s901_s16 = sshll.u32 %s1065_s1, 4  ;;  %s902_s16 = int_to_ptr.vmem [resolvable:$true] %s901_s16 }
  0x11   :  { %s1036_s17 = scalar_lea.vmem %s902_s16, 16  ;;  %s1040_s18 = scalar_lea.vmem %s902_s16, 32 }
  0x12   :  { %v1093_v4 = vadd.s32 128, %v1087_v2  ;;  %v74_v5 = vadd.s32 24, %v1090_v3  ;;  %v1097_v6 = vadd.s32 384, %v1087_v2  ;;  %v1100_v7 = vadd.s32 256, %v1087_v2  ;;  %p1037_p5 = scmp.ne.s32.totalorder %s902_s16, %s1036_s17  ;;  %p1041_p6 = scmp.lt.s32.totalorder %s902_s16, %s902_s16 }
  0x13   :  { %v73_v8 = vadd.s32 16, %v1090_v3  ;;  %v72_v9 = vadd.s32 8, %v1090_v3  ;;  %v1128_v22 = vmul.u32 36, %v1090_v3  ;;  %v1147_v28 = vadd.s32 640, %v1087_v2  ;;  %p1042_p7 = scmp.lt.s32.totalorder %s1040_s18, %s1036_s17 }
  0x14   :  { %v1104_v10 = vmul.u32 36, %v74_v5  ;;  %v1155_v30 = vadd.s32 896, %v1087_v2  ;;  %v1163_v32 = vadd.s32 512, %v1087_v2  ;;  %v1171_v34 = vadd.s32 768, %v1087_v2 }
  0x15   :  { %v1106_v11 = vmul.u32 36, %v73_v8  ;;  %v1108_v12 = vmul.u32 36, %v72_v9  ;;  %v80_v27 = vsub.s32 %v1093_v4, %v1128_v22  ;;  %v82_v29 = vsub.s32 %v1097_v6, %v1128_v22  ;;  %p1043_p8 = por %p1042_p7, %p1041_p6 }
  0x16   :  { %v107_v13 = vsub.s32 %v1093_v4, %v1104_v10  ;;  %v109_v14 = vsub.s32 %v1097_v6, %v1104_v10  ;;  %v106_v15 = vsub.s32 %v1087_v2, %v1104_v10  ;;  %v108_v16 = vsub.s32 %v1100_v7, %v1104_v10 }
  0x17   :  { %v98_v17 = vsub.s32 %v1093_v4, %v1106_v11  ;;  %v100_v18 = vsub.s32 %v1097_v6, %v1106_v11  ;;  %v97_v19 = vsub.s32 %v1087_v2, %v1106_v11  ;;  %v99_v20 = vsub.s32 %v1100_v7, %v1106_v11  ;;  %p1044_p9 = pnand %p1043_p8, %p1037_p5 }
  0x18   :  { %vm143_vm0 = vcmp.ge.s32.totalorder %v107_v13, 0  ;;  %vm179_vm1 = vcmp.lt.s32.totalorder %v107_v13, 36  ;;  %vm145_vm2 = vcmp.ge.s32.totalorder %v109_v14, 0  ;;  %vm181_vm3 = vcmp.lt.s32.totalorder %v109_v14, 36 }
  0x19   :  { %vm215_vm4 = vmand %vm143_vm0, %vm179_vm1  ;;  %vm142_vm5 = vcmp.ge.s32.totalorder %v106_v15, 0  ;;  %vm178_vm6 = vcmp.lt.s32.totalorder %v106_v15, 36  ;;  %vm144_vm7 = vcmp.ge.s32.totalorder %v108_v16, 0  ;;  %vm180_vm8 = vcmp.lt.s32.totalorder %v108_v16, 36 }
  0x1a   :  { %951 = vmatprep.subr.msk.mxu0 %vm215_vm4, %v1062_v21  ;;  %vm217_vm9 = vmand %vm145_vm2, %vm181_vm3  ;;  %vm134_vm10 = vcmp.ge.s32.totalorder %v98_v17, 0  ;;  %vm170_vm11 = vcmp.lt.s32.totalorder %v98_v17, 36  ;;  %vm136_vm13 = vcmp.ge.s32.totalorder %v100_v18, 0  ;;  %vm172_vm14 = vcmp.lt.s32.totalorder %v100_v18, 36 }
  0x1b   :  { %960 = vmatprep.subr.msk.mxu1 %vm217_vm9, %v1062_v21  ;;  %vm214_vm12 = vmand %vm142_vm5, %vm178_vm6  ;;  %vm133_vm15 = vcmp.ge.s32.totalorder %v97_v19, 0  ;;  %vm169_vm1 = vcmp.lt.s32.totalorder %v97_v19, 36  ;;  %v89_v23 = vsub.s32 %v1093_v4, %v1108_v12  ;;  %v91_v24 = vsub.s32 %v1097_v6, %v1108_v12 }
  0x1c   :  { %952 = vmatpush1.msk.msra.mxu0 %vm214_vm12, %v1062_v21  ;;  %vm216_vm0 = vmand %vm144_vm7, %vm180_vm8  ;;  %v88_v25 = vsub.s32 %v1087_v2, %v1108_v12  ;;  %vm135_vm3 = vcmp.ge.s32.totalorder %v99_v20, 0  ;;  %vm171_vm4 = vcmp.lt.s32.totalorder %v99_v20, 36  ;;  %v90_v26 = vsub.s32 %v1100_v7, %v1108_v12 }
  0x1d   :  { %961 = vmatpush1.msk.msra.mxu1 %vm216_vm0, %v1062_v21  ;;  %vm206_vm2 = vmand %vm134_vm10, %vm170_vm11  ;;  %vm125_vm6 = vcmp.ge.s32.totalorder %v89_v23, 0  ;;  %vm161_vm7 = vcmp.lt.s32.totalorder %v89_v23, 36  ;;  %vm127_vm9 = vcmp.ge.s32.totalorder %v91_v24, 0  ;;  %vm163_vm10 = vcmp.lt.s32.totalorder %v91_v24, 36 }
  0x1e   :  { %953 = vmatprep.subr.msk.mxu0 %vm206_vm2, %v1062_v21  ;;  %vm208_vm5 = vmand %vm136_vm13, %vm172_vm14  ;;  %vm124_vm12 = vcmp.ge.s32.totalorder %v88_v25, 0  ;;  %vm160_vm13 = vcmp.lt.s32.totalorder %v88_v25, 36  ;;  %v79_v31 = vsub.s32 %v1087_v2, %v1128_v22  ;;  %vm162_vm0 = vcmp.lt.s32.totalorder %v90_v26, 36 }
  0x1f   :  { %962 = vmatprep.subr.msk.mxu1 %vm208_vm5, %v1062_v21  ;;  %vm205_vm8 = vmand %vm133_vm15, %vm169_vm1  ;;  %vm126_vm15 = vcmp.ge.s32.totalorder %v90_v26, 0  ;;  %v81_v33 = vsub.s32 %v1100_v7, %v1128_v22  ;;  %vm116_vm2 = vcmp.ge.s32.totalorder %v80_v27, 0  ;;  %v111_v36 = vsub.s32 %v1147_v28, %v1104_v10 }
  0x20   :  { %954 = vmatpush1.msk.msra.mxu0 %vm205_vm8, %v1062_v21  ;;  %vm207_vm11 = vmand %vm135_vm3, %vm171_vm4  ;;  %vm152_vm3 = vcmp.lt.s32.totalorder %v80_v27, 36  ;;  %vm118_vm5 = vcmp.ge.s32.totalorder %v82_v29, 0  ;;  %v113_v37 = vsub.s32 %v1155_v30, %v1104_v10  ;;  %vm115_vm8 = vcmp.ge.s32.totalorder %v79_v31, 0 }
  0x21   :  { %963 = vmatpush1.msk.msra.mxu1 %vm207_vm11, %v1062_v21  ;;  %vm197_vm14 = vmand %vm125_vm6, %vm161_vm7  ;;  %vm154_vm6 = vcmp.lt.s32.totalorder %v82_v29, 36  ;;  %v110_v38 = vsub.s32 %v1163_v32, %v1104_v10  ;;  %vm117_vm11 = vcmp.ge.s32.totalorder %v81_v33, 0  ;;  %v112_v40 = vsub.s32 %v1171_v34, %v1104_v10 }
  0x22   :  { %955 = vmatprep.subr.msk.mxu0 %vm197_vm14, %v1062_v21  ;;  %vm199_vm1 = vmand %vm127_vm9, %vm163_vm10  ;;  %vm151_vm9 = vcmp.lt.s32.totalorder %v79_v31, 36  ;;  %vm1368_vm14 = vcmask 261120   ;;  %v102_v41 = vsub.s32 %v1147_v28, %v1106_v11  ;;  %v104_v42 = vsub.s32 %v1155_v30, %v1106_v11 }
  0x23   :  { %964 = vmatprep.subr.msk.mxu1 %vm199_vm1, %v1062_v21  ;;  %vm196_vm4 = vmand %vm124_vm12, %vm160_vm13  ;;  %vm153_vm12 = vcmp.lt.s32.totalorder %v81_v33, 36  ;;  %v101_v43 = vsub.s32 %v1163_v32, %v1106_v11  ;;  %v103_v44 = vsub.s32 %v1171_v34, %v1106_v11  ;;  %v93_v45 = vsub.s32 %v1147_v28, %v1108_v12 }
  0x24   :  { %956 = vmatpush1.msk.msra.mxu0 %vm196_vm4, %v1062_v21  ;;  %vm198_vm7 = vmand %vm126_vm15, %vm162_vm0  ;;  %vm147_vm15 = vcmp.ge.s32.totalorder %v111_v36, 0  ;;  %vm183_vm0 = vcmp.lt.s32.totalorder %v111_v36, 36  ;;  %v95_v46 = vsub.s32 %v1155_v30, %v1108_v12  ;;  %v92_v47 = vsub.s32 %v1163_v32, %v1108_v12 }
  0x25   :  { %965 = vmatpush1.msk.msra.mxu1 %vm198_vm7, %v1062_v21  ;;  %vm188_vm10 = vmand %vm116_vm2, %vm152_vm3  ;;  %vm149_vm2 = vcmp.ge.s32.totalorder %v113_v37, 0  ;;  %vm185_vm3 = vcmp.lt.s32.totalorder %v113_v37, 36  ;;  %v94_v48 = vsub.s32 %v1171_v34, %v1108_v12  ;;  %v84_v49 = vsub.s32 %v1147_v28, %v1128_v22 }
  0x26   :  { %957 = vmatprep.subr.msk.mxu0 %vm188_vm10, %v1062_v21  ;;  %vm190_vm13 = vmand %vm118_vm5, %vm154_vm6  ;;  %vm146_vm5 = vcmp.ge.s32.totalorder %v110_v38, 0  ;;  %vm182_vm6 = vcmp.lt.s32.totalorder %v110_v38, 36  ;;  %v1247_v50 = vadd.s32 1024, %v1087_v2  ;;  %v86_v51 = vsub.s32 %v1155_v30, %v1128_v22 }
  0x27   :  { %966 = vmatprep.subr.msk.mxu1 %vm190_vm13, %v1062_v21  ;;  %vm187_vm1 = vmand %vm115_vm8, %vm151_vm9  ;;  %vm148_vm8 = vcmp.ge.s32.totalorder %v112_v40, 0  ;;  %vm184_vm9 = vcmp.lt.s32.totalorder %v112_v40, 36  ;;  %v83_v52 = vsub.s32 %v1163_v32, %v1128_v22  ;;  %v85_v53 = vsub.s32 %v1171_v34, %v1128_v22 }
  0x28   :  { %958 = vmatpush1.msk.msra.mxu0 %vm187_vm1, %v1062_v21  ;;  %vm189_vm4 = vmand %vm117_vm11, %vm153_vm12  ;;  %vm138_vm11 = vcmp.ge.s32.totalorder %v102_v41, 0  ;;  %vm174_vm12 = vcmp.lt.s32.totalorder %v102_v41, 36  ;;  %v114_v54 = vsub.s32 %v1247_v50, %v1104_v10  ;;  %v105_v55 = vsub.s32 %v1247_v50, %v1106_v11 }
  0x29   :  { %967 = vmatpush1.msk.msra.mxu1 %vm189_vm4, %v1062_v21  ;;  %959 = vmatmul.mubr.msk.f32.vlgmr.msra.gmra.mxu0 %vm1368_vm14, %v1193_v39  ;;  %vm219_vm7 = vmand %vm147_vm15, %vm183_vm0  ;;  %vm140_vm15 = vcmp.ge.s32.totalorder %v104_v42, 0  ;;  %vm176_vm0 = vcmp.lt.s32.totalorder %v104_v42, 36  ;;  %v96_v56 = vsub.s32 %v1247_v50, %v1108_v12  ;;  %v87_v57 = vsub.s32 %v1247_v50, %v1128_v22 }
  0x2a   :  { %968 = vmatmul.mubr.msk.f32.vlgmr.msra.gmra.mxu1 %vm1368_vm14, %v1193_v39  ;;  %969 = vmatprep.subr.msk.mxu0 %vm219_vm7, %v1062_v21  ;;  %vm221_vm10 = vmand %vm149_vm2, %vm185_vm3  ;;  %vm137_vm2 = vcmp.ge.s32.totalorder %v101_v43, 0  ;;  %vm173_vm3 = vcmp.lt.s32.totalorder %v101_v43, 36  ;;  %vm155_vm14 = vcmp.lt.s32.totalorder %v83_v52, 36  ;;  %v676_v61 = vsub.s32 0, %v1090_v3 }
  0x2b   :  { %978 = vmatprep.subr.msk.mxu1 %vm221_vm10, %v1062_v21  ;;  %vm218_vm13 = vmand %vm146_vm5, %vm182_vm6  ;;  %506 = vmatprep.mubr.f32.mxu0 %v1061_v1  ;;  %vm139_vm5 = vcmp.ge.s32.totalorder %v103_v44, 0  ;;  %vm175_vm6 = vcmp.lt.s32.totalorder %v103_v44, 36  ;;  %v680_v62 = vsub.s32 1, %v1090_v3  ;;  %v654_v5 = vcvt.s32.f32 %v1087_v2 }
  0x2c   :  { %970 = vmatpush1.msk.msra.mxu0 %vm218_vm13, %v1062_v21  ;;  %vm220_vm1 = vmand %vm148_vm8, %vm184_vm9  ;;  %577 = vmatprep.mubr.f32.mxu1 %v1061_v1  ;;  %vm129_vm8 = vcmp.ge.s32.totalorder %v93_v45, 0  ;;  %vm165_vm9 = vcmp.lt.s32.totalorder %v93_v45, 36  ;;  %v684_v8 = vsub.s32 2, %v1090_v3  ;;  %v688_v9 = vsub.s32 3, %v1090_v3 }
  0x2d   :  { %979 = vmatpush1.msk.msra.mxu1 %vm220_vm1, %v1062_v21  ;;  %vm210_vm4 = vmand %vm138_vm11, %vm174_vm12  ;;  %vm131_vm11 = vcmp.ge.s32.totalorder %v95_v46, 0  ;;  %vm167_vm12 = vcmp.lt.s32.totalorder %v95_v46, 36  ;;  %v656_v10 = vcvt.s32.f32 %v1100_v7  ;;  %v1064_v12 = vmov 1966171168  }
  0x2e   :  { %971 = vmatprep.subr.msk.mxu0 %vm210_vm4, %v1062_v21  ;;  %vm212_vm7 = vmand %vm140_vm15, %vm176_vm0  ;;  %vm128_vm15 = vcmp.ge.s32.totalorder %v92_v47, 0  ;;  %vm164_vm0 = vcmp.lt.s32.totalorder %v92_v47, 36  ;;  %vm130_vm4 = vcmp.ge.s32.totalorder %v94_v48, 0  ;;  %v753_v13 = vunpack.c.l.s4 %v1064_v12 }
  0x2f   :  { %980 = vmatprep.subr.msk.mxu1 %vm212_vm7, %v1062_v21  ;;  %vm209_vm10 = vmand %vm137_vm2, %vm173_vm3  ;;  %vm166_vm2 = vcmp.lt.s32.totalorder %v94_v48, 36  ;;  %vm120_vm7 = vcmp.ge.s32.totalorder %v84_v49, 0  ;;  %v677_v15 = vrot.slane %v57_v63, %v676_v61  ;;  %v681_v2 = vrot.slane %v57_v63, %v680_v62 }
  0x30   :  { %972 = vmatpush1.msk.msra.mxu0 %vm209_vm10, %v1062_v21  ;;  %vm211_vm13 = vmand %vm139_vm5, %vm175_vm6  ;;  %vm156_vm10 = vcmp.lt.s32.totalorder %v84_v49, 36  ;;  %vm122_vm6 = vcmp.ge.s32.totalorder %v86_v51, 0  ;;  %v754_v17 = vunpack.c.0.s8 %v753_v13  ;;  %v692_v18 = vsub.s32 4, %v1090_v3 }
  0x31   :  { %981 = vmatpush1.msk.msra.mxu1 %vm211_vm13, %v1062_v21  ;;  %vm201_vm1 = vmand %vm129_vm8, %vm165_vm9  ;;  %vm158_vm13 = vcmp.lt.s32.totalorder %v86_v51, 36  ;;  %vm119_vm9 = vcmp.ge.s32.totalorder %v83_v52, 0  ;;  %v696_v22 = vsub.s32 5, %v1090_v3  ;;  %v658_v25 = vcvt.s32.f32 %v1163_v32 }
  0x32   :  { %973 = vmatprep.subr.msk.mxu0 %vm201_vm1, %v1062_v21  ;;  %vm203_vm3 = vmand %vm131_vm11, %vm167_vm12  ;;  %vm121_vm12 = vcmp.ge.s32.totalorder %v85_v53, 0  ;;  %vm157_vm1 = vcmp.lt.s32.totalorder %v85_v53, 36  ;;  %v704_v26 = vsub.s32 7, %v1090_v3  ;;  %v660_v27 = vcvt.s32.f32 %v1171_v34 }
  0x33   :  { %982 = vmatprep.subr.msk.mxu1 %vm203_vm3, %v1062_v21  ;;  %vm200_vm5 = vmand %vm128_vm15, %vm164_vm0  ;;  %vm150_vm0 = vcmp.ge.s32.totalorder %v114_v54, 0  ;;  %vm186_vm3 = vcmp.lt.s32.totalorder %v114_v54, 36  ;;  %v757_v31 = vsub.s32 %v754_v17, %v1090_v3  ;;  %v659_v33 = vcvt.s32.f32 %v1147_v28  ;;  %v992_v54 = vld [vmem:[#allocation3 + $0x8] ss:$0 sm:$0xff] }
  0x34   :  { %974 = vmatpush1.msk.msra.mxu0 %vm200_vm5, %v1062_v21  ;;  %vm202_vm8 = vmand %vm130_vm4, %vm166_vm2  ;;  %vm141_vm2 = vcmp.ge.s32.totalorder %v105_v55, 0  ;;  %vm177_vm4 = vcmp.lt.s32.totalorder %v105_v55, 36  ;;  %v693_v37 = vrot.slane %v57_v63, %v692_v18  ;;  %v697_v38 = vrot.slane %v57_v63, %v696_v22 }
  0x35   :  { %983 = vmatpush1.msk.msra.mxu1 %vm202_vm8, %v1062_v21  ;;  %vm192_vm11 = vmand %vm120_vm7, %vm156_vm10  ;;  %vm1369_vm10 = vcmask 261120   ;;  %v705_v41 = vrot.slane %v57_v63, %v704_v26 }
  0x36   :  { %975 = vmatprep.subr.msk.mxu0 %vm192_vm11, %v1062_v21  ;;  %vm194_vm15 = vmand %vm122_vm6, %vm158_vm13  ;;  %vm132_vm6 = vcmp.ge.s32.totalorder %v96_v56, 0  ;;  %vm168_vm13 = vcmp.lt.s32.totalorder %v96_v56, 36 }
  0x37   :  { %984 = vmatprep.subr.msk.mxu1 %vm194_vm15, %v1062_v21  ;;  %vm191_vm5 = vmand %vm119_vm9, %vm155_vm14  ;;  %vm123_vm9 = vcmp.ge.s32.totalorder %v87_v57, 0  ;;  %vm159_vm15 = vcmp.lt.s32.totalorder %v87_v57, 36 }
  0x38   :  { %976 = vmatpush1.msk.msra.mxu0 %vm191_vm5, %v1062_v21  ;;  %vm193_vm7 = vmand %vm121_vm12, %vm157_vm1  ;;  %vm1063_vm5 = vmmov 0  }
  0x39   :  { %985 = vmatpush1.msk.msra.mxu1 %vm193_vm7, %v1062_v21  ;;  %977 = vmatmul.mubr.msk.f32.vlgmr.msra.gmra.mxu0 %vm1369_vm10, %v1193_v39  ;;  %vm222_vm8 = vmand %vm150_vm0, %vm186_vm3  ;;  %vm1294_vm3 = vcmp.lt.s32.totalorder %v52_v0, 128  ;;  %v655_v0 = vcvt.s32.f32 %v1093_v4  ;;  %v685_v4 = vrot.slane %v57_v63, %v684_v8 }
  0x3a   :  { %vm1370_vm11 = vmmov %vm1369_vm10  ;;  %999 = vmatprep.subr.mxu0 %v1061_v1  ;;  %1007 = vmatprep.mubr.msk.f32.mxu0 %vm1063_vm5, %v1061_v1  ;;  %56 = vst.msk [vmem:[#allocation2 + $0x8] sm:$0x1] %vm1294_vm3, %v1061_v1 }
  0x3b   :  { %986 = vmatmul.mubr.msk.f32.vlgmr.msra.gmra.mxu1 %vm1370_vm11, %v1193_v39  ;;  %vm213_vm14 = vmand %vm141_vm2, %vm177_vm4  ;;  %1000 = vmatpush3.msk.msra.mxu0 %vm222_vm8, %v1062_v21 }
  0x3c   :  { %1001 = vmatprep.subr.mxu0 %v1061_v1  ;;  %vm204_vm12 = vmand %vm132_vm6, %vm168_vm13 }
  0x3d   :  { %1002 = vmatpush3.msk.msra.mxu0 %vm213_vm14, %v1062_v21  ;;  %vm195_vm1 = vmand %vm123_vm9, %vm159_vm15  ;;  %vm873_vm9 = vcmask 1040384   ;;  %vm893_vm15 = vcmask 0  }
  0x3e   :  { %1003 = vmatprep.subr.mxu0 %v1061_v1  ;;  %vm1371_vm0 = vmmov %vm1369_vm10 }
  0x3f   :  { %1004 = vmatpush3.msk.msra.mxu0 %vm204_vm12, %v1062_v21 }
  0x40   :  { %1005 = vmatprep.subr.mxu0 %v1061_v1  ;;  %v657_v1 = vcvt.s32.f32 %v1097_v6  ;;  %v689_v6 = vrot.slane %v57_v63, %v688_v9 }
  0x41   :  { %1006 = vmatpush3.msk.msra.mxu0 %vm195_vm1, %v1062_v21  ;;  %v700_v21 = vsub.s32 6, %v1090_v3 }
  0x42   :  { %1008 = vmatmul.mubr.msk.f32.vlgmr.msra.gmra.mxu0 %vm1371_vm0, %v1193_v39  ;;  %v661_v39 = vcvt.s32.f32 %v1155_v30  ;;  %v662_v30 = vcvt.s32.f32 %v1247_v50 }
  0x43   :  { %v701_v32 = vrot.slane %v57_v63, %v700_v21 }
  0xe9   :  { %v366_v59 = vpop.f32.mrf.mxu0 }
  0xea   :  { %v437_v60 = vpop.f32.mrf.mxu1  ;;  %vm1313_vm2 = vcmp.eq.f32.partialorder %v654_v5, %v366_v59 }
  0xeb   :  { %v368_v11 = vpop.f32.mrf.mxu0  ;;  %vm1321_vm7 = vcmp.eq.f32.partialorder %v656_v10, %v437_v60  ;;  %v719_v19 = vsel %vm1313_vm2, %v677_v15, 0.0 }
  0xec   :  { %v439_v14 = vpop.f32.mrf.mxu1  ;;  %vm664_vm4 = vcmp.eq.f32.partialorder %v655_v0, %v368_v11  ;;  %v721_v23 = vsel %vm1321_vm7, %v685_v4, 0.0  ;;  %v729_v0 = vld [vmem:[#allocation2 + $0x8] sm:$0x1] }
  0xed   :  { %vm666_vm10 = vcmp.eq.f32.partialorder %v657_v1, %v439_v14  ;;  %v720_v20 = vsel %vm664_vm4, %v681_v2, 0.0 }
  0xee   :  { %v722_v24 = vsel %vm666_vm10, %v689_v6, 0.0  ;;  %v748_v29 = vcombine.low %v719_v19, %v720_v20 }
  0xef   :  { %v749_v35 = vcombine.low %v721_v23, %v722_v24 }
  0xf0   :  { %v758_v34 = vrot.slane %v748_v29, %v757_v31 }
  0xf1   :  { %v765_v44 = vrot.slane %v749_v35, %v757_v31 }
  0xf3   :  { %v780_v52 = vcombine.low %v758_v34, %v765_v44 }
  0xf5   :  { %v788_v60 = vrot.slane %v780_v52, %v757_v31 }
  0xf9   :  { %v508_v36 = vpop.f32.mrf.mxu0 }
  0xfa   :  { %vm667_vm8 = vcmp.eq.f32.partialorder %v658_v25, %v508_v36 }
  0xfb   :  { %v579_v40 = vpop.f32.mrf.mxu1  ;;  %v510_v42 = vpop.f32.mrf.mxu0  ;;  %v723_v45 = vsel %vm667_vm8, %v693_v37, 0.0 }
  0xfc   :  { %vm669_vm6 = vcmp.eq.f32.partialorder %v660_v27, %v579_v40  ;;  %vm668_vm13 = vcmp.eq.f32.partialorder %v659_v33, %v510_v42 }
  0xfd   :  { %v581_v43 = vpop.f32.mrf.mxu1  ;;  %v724_v28 = vsel %vm668_vm13, %v697_v38, 0.0  ;;  %v725_v46 = vsel %vm669_vm6, %v701_v32, 0.0 }
  0xfe   :  { %vm670_vm11 = vcmp.eq.f32.partialorder %v661_v39, %v581_v43  ;;  %v750_v47 = vcombine.low %v723_v45, %v724_v28 }
  0xff   :  { %v726_v48 = vsel %vm670_vm11, %v705_v41, 0.0 }
 0x100   :  { %v751_v49 = vcombine.low %v725_v46, %v726_v48  ;;  %v772_v51 = vrot.slane %v750_v47, %v757_v31 }
 0x102   :  { %v779_v53 = vrot.slane %v751_v49, %v757_v31  ;;  %v650_v55 = vpop.f32.mrf.mxu0 }
 0x103   :  { %vm671_vm14 = vcmp.eq.f32.partialorder %v662_v30, %v650_v55 }
 0x104   :  { %v781_v56 = vcombine.low %v772_v51, %v779_v53  ;;  %v727_v57 = vsel %vm671_vm14, %v992_v54, 0.0  ;;  %v1009_v59 = vpop.f32.mrf.mxu0 }
 0x105   :  { %v803_v5 = vrot.slane %v727_v57, %v757_v31 }
 0x106   :  { %v795_v63 = vrot.slane %v781_v56, %v757_v31 }
 0x107   :  { %v810_v11 = vrot.slane %v803_v5, %v757_v31 }
 0x108   :  { %v796_v10 = vcombine.low %v788_v60, %v795_v63 }
 0x109   :  { %v814_v1 = vadd.f32 %v810_v11, %v729_v0 }
 0x10a   :  { %v831_v50 = vrot.slane %v796_v10, %v676_v61  ;;  %v835_v12 = vrot.slane %v796_v10, %v680_v62  ;;  %v839_v13 = vrot.slane %v796_v10, %v684_v8  ;;  %v843_v14 = vrot.slane %v796_v10, %v688_v9 }
 0x10b   :  { %820 = vst.msk [vmem:[#allocation2 + $0x8] sm:$0x1] %vm1294_vm3, %v814_v1  ;;  %v847_v4 = vrot.slane %v796_v10, %v692_v18  ;;  %v851_v7 = vrot.slane %v796_v10, %v696_v22  ;;  %v855_v62 = vrot.slane %v796_v10, %v700_v21  ;;  %v859_v9 = vrot.slane %v796_v10, %v704_v26 }
 0x10c   :  { %v874_v15 = vsel %vm873_vm9, %v831_v50, 0.0  ;;  %v875_v2 = vsel %vm873_vm9, %v835_v12, 0.0  ;;  %v877_v58 = vsel %vm873_vm9, %v839_v13, 0.0  ;;  %v879_v61 = vsel %vm873_vm9, %v843_v14, 0.0 }
 0x10d   :  { %v876_v16 = vadd.f32 %v875_v2, %v874_v15  ;;  %v881_v8 = vsel %vm873_vm9, %v847_v4, 0.0  ;;  %v883_v20 = vsel %vm873_vm9, %v851_v7, 0.0  ;;  %v885_v18 = vsel %vm873_vm9, %v855_v62, 0.0 }
 0x10e   :  { %v887_v27 = vsel %vm873_vm9, %v859_v9, 0.0 }
 0x10f   :  { %v878_v6 = vadd.f32 %v877_v58, %v876_v16 }
 0x111   :  { %v880_v17 = vadd.f32 %v879_v61, %v878_v6 }
 0x112   :  { %v993_v23 = vld [vmem:[#allocation2 + $0x8] ss:$0 sm:$0xff] }
 0x113   :  { %v882_v19 = vadd.f32 %v881_v8, %v880_v17  ;;  %v889_v22 = vsel %vm873_vm9, %v993_v23, 0.0 }
 0x115   :  { %v884_v24 = vadd.f32 %v883_v20, %v882_v19 }
 0x117   :  { %v886_v25 = vadd.f32 %v885_v18, %v884_v24 }
 0x119   :  { %v888_v29 = vadd.f32 %v887_v27, %v886_v25 }
 0x11b   :  { %v890_v31 = vadd.f32 %v889_v22, %v888_v29 }
 0x11d   :  { %891 = vadd.xlane.f32.xlu0 %v890_v31 }
 0x1a6   :  { %v892_v3 = vpop.xlane.xlu0 %891 }
 0x1a7   :  { %894 = vst.msk [vmem:[#allocation6] sm:$0x1] %vm893_vm15, %v892_v3 }
 0x1a8   :  { %1047 = shalt.err (!%p1044_p9)
}
 0x1a9   :  { %904 = dma.vmem_to_hbm [thread:$0]  %s902_s16, 16, %s1367_s2, [#allocation5]  }
 0x1aa   :  { %1058 = dma.done.wait [#allocation5], 16  }
 0x1ab   :  { %1059 = vsyncadd [#allocation5], 4294967280 }
 0x1ac   :  { %908 = vsyncpa [#allocation4], 1 }
 0x1ad   :  { %909 = vsyncpa [#allocation5], 1 }

</bundles_post_ra>
